<compile_context>
chip_gen: v6e
topology: v6e:2x2x1
jax: 0.10.0
libtpu: 0.0.40
codegen_flags: <defaults>
</compile_context>

<pallas_src>
import math
import functools

import jax
import jax.numpy as jnp
from jax.experimental import pallas as pl
from jax.experimental.pallas import tpu as pltpu


# ----------------------------- Pallas kernel ------------------------------- #
def _transformer_block_kernel(
    x_ref,            # (L, E)  f32   -- one batch element's rows
    wqkv_ref,         # (E, 3E) bf16  (pre-transposed, fused q|k|v, scale folded into q)
    bqkv_ref,         # (1, 3E) f32
    wo_ref, bo_ref,   # (E, E) bf16, (1, E) f32
    w1_ref, b1_ref,   # (E, F) bf16, (1, F) f32
    w2_ref, b2_ref,   # (F, E) bf16, (1, E) f32
    g1_ref, be1_ref,  # (1, E) f32
    g2_ref, be2_ref,  # (1, E) f32
    o_ref,            # (L, E) f32
    attn_ref,         # (L, E) f32 VMEM scratch: per-head attention outputs
    *, num_heads, eps,
):
    x = x_ref[...]                                  # (L, E) f32
    E = x.shape[-1]
    dh = E // num_heads

    # ---- fused Q/K/V projection: one (L, E) x (E, 3E) MXU matmul ----
    qkv = jnp.dot(x.astype(jnp.bfloat16), wqkv_ref[...],
                  preferred_element_type=jnp.float32) + bqkv_ref[...]   # (L, 3E) f32

    # ---- scaled dot-product attention (per head) ----
    # Head outputs are written into their lane window of attn_ref; the output
    # projection is a single full-K matmul afterwards.
    for h in range(num_heads):
        cq = slice(h * dh, (h + 1) * dh)
        ck = slice(E + h * dh, E + (h + 1) * dh)
        cv = slice(2 * E + h * dh, 2 * E + (h + 1) * dh)
        qh = qkv[:, cq].astype(jnp.bfloat16)        # (L, dh)  (scale already folded in)
        kh = qkv[:, ck].astype(jnp.bfloat16)        # (L, dh)
        vh = qkv[:, cv].astype(jnp.bfloat16)        # (L, dh)
        # scores = qh @ kh^T (no explicit transpose), f32 accumulation
        s = jax.lax.dot_general(
            qh, kh, (((1,), (1,)), ((), ())),
            preferred_element_type=jnp.float32)     # (L, L)
        s = s - jnp.max(s, axis=-1, keepdims=True)
        p = jnp.exp(s)
        p = p * pl.reciprocal(jnp.sum(p, axis=-1, keepdims=True), approx=True)
        attn_ref[:, cq] = jnp.dot(p.astype(jnp.bfloat16), vh,
                                  preferred_element_type=jnp.float32)   # (L, dh)

    # ---- output projection: ONE (L,E) x (E,E) matmul with K = E ----
    attn_out = jnp.dot(attn_ref[...].astype(jnp.bfloat16), wo_ref[...],
                       preferred_element_type=jnp.float32) + bo_ref[...]

    # ---- residual + LayerNorm 1 (f32) ----
    h1 = x + attn_out
    mu1 = jnp.mean(h1, axis=-1, keepdims=True)
    var1 = jnp.mean(jnp.square(h1 - mu1), axis=-1, keepdims=True)
    n1 = (h1 - mu1) * jax.lax.rsqrt(var1 + eps) * g1_ref[...] + be1_ref[...]

    # ---- feed-forward: Linear -> ReLU -> Linear ----
    f = jnp.dot(n1.astype(jnp.bfloat16), w1_ref[...],
                preferred_element_type=jnp.float32) + b1_ref[...]
    f = jnp.maximum(f, 0.0)
    ff = jnp.dot(f.astype(jnp.bfloat16), w2_ref[...],
                 preferred_element_type=jnp.float32) + b2_ref[...]

    # ---- residual + LayerNorm 2 (f32) ----
    h2 = n1 + ff
    mu2 = jnp.mean(h2, axis=-1, keepdims=True)
    var2 = jnp.mean(jnp.square(h2 - mu2), axis=-1, keepdims=True)
    o_ref[...] = (h2 - mu2) * jax.lax.rsqrt(var2 + eps) * g2_ref[...] + be2_ref[...]


# ------------------------------ wrapper ------------------------------------ #
def transformer_block_forward(x_lne, params, num_heads):
    """x_lne: (L, N, E) float32 (PyTorch nn.MultiheadAttention layout). Returns (L, N, E)."""
    L, N, E = x_lne.shape
    dh = E // num_heads
    scale = 1.0 / math.sqrt(dh)

    # (L, N, E) -> (N, L, E) -> (N*L, E): batch n occupies rows [n*L, (n+1)*L).
    x = jnp.transpose(x_lne, (1, 0, 2)).astype(jnp.float32).reshape(N * L, E)

    # Fuse Q/K/V into one (E, 3E) weight; fold 1/sqrt(dh) into W_q / b_q.
    wqkv = jnp.concatenate([params["wq"] * scale, params["wk"], params["wv"]], axis=1)
    bqkv = jnp.concatenate([params["bq"] * scale, params["bk"], params["bv"]], axis=1)
    bf = lambda w: w.astype(jnp.bfloat16)

    kernel = functools.partial(
        _transformer_block_kernel, num_heads=num_heads, eps=1e-5)

    # Per-grid-step row block = one batch element's L rows (softmax / LayerNorm
    # statistics never cross a block).  Weights get constant index_maps so they
    # are fetched once and held resident across the grid.
    row_spec = pl.BlockSpec((L, E), lambda n: (n, 0))
    w_spec = lambda a: pl.BlockSpec(a.shape, lambda n: (0, 0))

    grid_spec = pltpu.PrefetchScalarGridSpec(
        num_scalar_prefetch=0,
        grid=(N,),
        in_specs=[
            row_spec,
            w_spec(wqkv), w_spec(bqkv),
            w_spec(params["wo"]), w_spec(params["bo"]),
            w_spec(params["w1"]), w_spec(params["b1"]),
            w_spec(params["w2"]), w_spec(params["b2"]),
            w_spec(params["g1"]), w_spec(params["be1"]),
            w_spec(params["g2"]), w_spec(params["be2"]),
        ],
        out_specs=pl.BlockSpec((L, E), lambda n: (n, 0)),
        scratch_shapes=[pltpu.VMEM((L, E), jnp.float32)],
    )

    out = pl.pallas_call(
        kernel,
        out_shape=jax.ShapeDtypeStruct((N * L, E), jnp.float32),
        grid_spec=grid_spec,
        compiler_params=pltpu.CompilerParams(
            dimension_semantics=("parallel",),
            vmem_limit_bytes=32 * 1024 * 1024,
        ),
    )(
        x,
        bf(wqkv), bqkv.astype(jnp.float32),
        bf(params["wo"]), params["bo"],
        bf(params["w1"]), params["b1"],
        bf(params["w2"]), params["b2"],
        params["g1"], params["be1"], params["g2"], params["be2"],
    )
    return jnp.transpose(out.reshape(N, L, E), (1, 0, 2))        # back to (L, N, E)


# ------------------------- pure-JAX reference (f32) ------------------------ #
def transformer_block_reference(x_lne, params, num_heads):
    x = jnp.transpose(x_lne, (1, 0, 2)).astype(jnp.float32)     # (N, L, E)
    N, L, E = x.shape
    dh = E // num_heads
    scale = 1.0 / math.sqrt(dh)
    eps = 1e-5

    q = x @ params["wq"] + params["bq"]
    k = x @ params["wk"] + params["bk"]
    v = x @ params["wv"] + params["bv"]

    def split(t):  # (N, L, E) -> (N, H, L, dh)
        return t.reshape(N, L, num_heads, dh).transpose(0, 2, 1, 3)

    qh, kh, vh = split(q) * scale, split(k), split(v)
    s = jnp.einsum("nhld,nhmd->nhlm", qh, kh)
    p = jax.nn.softmax(s, axis=-1)
    o = jnp.einsum("nhlm,nhmd->nhld", p, vh)
    attn = o.transpose(0, 2, 1, 3).reshape(N, L, E)
    attn_out = attn @ params["wo"] + params["bo"]

    def ln(t, g, b):
        mu = jnp.mean(t, axis=-1, keepdims=True)
        var = jnp.mean((t - mu) ** 2, axis=-1, keepdims=True)
        return (t - mu) * jax.lax.rsqrt(var + eps) * g + b

    n1 = ln(x + attn_out, params["g1"], params["be1"])
    ff = jnp.maximum(n1 @ params["w1"] + params["b1"], 0.0) @ params["w2"] + params["b2"]
    n2 = ln(n1 + ff, params["g2"], params["be2"])
    return jnp.transpose(n2, (1, 0, 2))


# ------------------------------- main --------------------------------------- #
if __name__ == "__main__":
    # Small, deterministic config: seq=8, batch=2, embed=32, heads=4, ff=64
    L, N, E, H, F = 8, 2, 32, 4, 64

    key = jax.random.PRNGKey(0)
    keys = jax.random.split(key, 13)
    init = lambda k, shape, s=0.02: (s * jax.random.normal(k, shape)).astype(jnp.float32)

    params = {
        # attention projections (stored pre-transposed: y = x @ W + b)
        "wq": init(keys[0], (E, E)), "bq": init(keys[1], (1, E)),
        "wk": init(keys[2], (E, E)), "bk": init(keys[3], (1, E)),
        "wv": init(keys[4], (E, E)), "bv": init(keys[5], (1, E)),
        "wo": init(keys[6], (E, E)), "bo": init(keys[7], (1, E)),
        # feed-forward
        "w1": init(keys[8], (E, F)), "b1": init(keys[9], (1, F)),
        "w2": init(keys[10], (F, E)), "b2": init(keys[11], (1, E)),
        # layer norms (PyTorch default init)
        "g1": jnp.ones((1, E), jnp.float32), "be1": jnp.zeros((1, E), jnp.float32),
        "g2": jnp.ones((1, E), jnp.float32), "be2": jnp.zeros((1, E), jnp.float32),
    }

    x = jax.random.normal(keys[12], (L, N, E), dtype=jnp.float32)

    out = jax.block_until_ready(transformer_block_forward(x, params, num_heads=H))
    ref = transformer_block_reference(x, params, num_heads=H)

    assert out.shape == (L, N, E)
    assert bool(jnp.all(jnp.isfinite(out)))
    # bf16 MXU inputs (f32 accumulation) + approx softmax reciprocal vs. pure-f32
    # reference -> tolerance loosened relative to a pure-f32 kernel.
    assert jnp.allclose(out, ref, atol=1e-2, rtol=1e-2), "Pallas kernel mismatch vs reference"

    print("KERNEL_OK")
</pallas_src>

<mosaic_0001>
module attributes {stable_mosaic.version = 11 : i64} {
  func.func @_transformer_block_kernel(%arg0: i32, %arg1: memref<8x32xf32, #tpu.memory_space<vmem>>, %arg2: memref<32x96xbf16, #tpu.memory_space<vmem>>, %arg3: memref<1x96xf32, #tpu.memory_space<vmem>>, %arg4: memref<32x32xbf16, #tpu.memory_space<vmem>>, %arg5: memref<1x32xf32, #tpu.memory_space<vmem>>, %arg6: memref<32x64xbf16, #tpu.memory_space<vmem>>, %arg7: memref<1x64xf32, #tpu.memory_space<vmem>>, %arg8: memref<64x32xbf16, #tpu.memory_space<vmem>>, %arg9: memref<1x32xf32, #tpu.memory_space<vmem>>, %arg10: memref<1x32xf32, #tpu.memory_space<vmem>>, %arg11: memref<1x32xf32, #tpu.memory_space<vmem>>, %arg12: memref<1x32xf32, #tpu.memory_space<vmem>>, %arg13: memref<1x32xf32, #tpu.memory_space<vmem>>, %arg14: memref<8x32xf32, #tpu.memory_space<vmem>>, %arg15: memref<8x32xf32, #tpu.memory_space<vmem>>) attributes {dimension_semantics = [#tpu.dimension_semantics<parallel>], iteration_bounds = array<i64: 2>, scalar_prefetch = 0 : i64, scratch_operands = 1 : i64, tpu.core_type = #tpu.core_type<tc>, window_params = [{transform_indices = @transform_0, window_bounds = array<i64: 8, 32>}, {pipeline_mode = #tpu.pipeline_mode<synchronous>, transform_indices = @transform_1, window_bounds = array<i64: 32, 96>}, {pipeline_mode = #tpu.pipeline_mode<synchronous>, transform_indices = @transform_2, window_bounds = array<i64: 1, 96>}, {pipeline_mode = #tpu.pipeline_mode<synchronous>, transform_indices = @transform_3, window_bounds = array<i64: 32, 32>}, {pipeline_mode = #tpu.pipeline_mode<synchronous>, transform_indices = @transform_4, window_bounds = array<i64: 1, 32>}, {pipeline_mode = #tpu.pipeline_mode<synchronous>, transform_indices = @transform_5, window_bounds = array<i64: 32, 64>}, {pipeline_mode = #tpu.pipeline_mode<synchronous>, transform_indices = @transform_6, window_bounds = array<i64: 1, 64>}, {pipeline_mode = #tpu.pipeline_mode<synchronous>, transform_indices = @transform_7, window_bounds = array<i64: 64, 32>}, {pipeline_mode = #tpu.pipeline_mode<synchronous>, transform_indices = @transform_8, window_bounds = array<i64: 1, 32>}, {pipeline_mode = #tpu.pipeline_mode<synchronous>, transform_indices = @transform_9, window_bounds = array<i64: 1, 32>}, {pipeline_mode = #tpu.pipeline_mode<synchronous>, transform_indices = @transform_10, window_bounds = array<i64: 1, 32>}, {pipeline_mode = #tpu.pipeline_mode<synchronous>, transform_indices = @transform_11, window_bounds = array<i64: 1, 32>}, {pipeline_mode = #tpu.pipeline_mode<synchronous>, transform_indices = @transform_12, window_bounds = array<i64: 1, 32>}, {transform_indices = @transform_13, window_bounds = array<i64: 8, 32>}]} {
    %c0 = arith.constant 0 : index
    %c0_0 = arith.constant 0 : index
    %0 = vector.load %arg1[%c0, %c0_0] : memref<8x32xf32, #tpu.memory_space<vmem>>, vector<8x32xf32>
    %1 = arith.truncf %0 : vector<8x32xf32> to vector<8x32xbf16>
    %c0_1 = arith.constant 0 : index
    %c0_2 = arith.constant 0 : index
    %2 = vector.load %arg2[%c0_1, %c0_2] : memref<32x96xbf16, #tpu.memory_space<vmem>>, vector<32x96xbf16>
    %cst = arith.constant dense<0.000000e+00> : vector<8x96xf32>
    %3 = tpu.matmul %1, %2, %cst {dimension_numbers = #tpu.dot_dimension_numbers<[1], [0], [0], [1], [0, 0, 1, 1], [], []>} : vector<8x32xbf16>, vector<32x96xbf16>, vector<8x96xf32> -> vector<8x96xf32>
    %c0_3 = arith.constant 0 : index
    %c0_4 = arith.constant 0 : index
    %4 = vector.load %arg3[%c0_3, %c0_4] : memref<1x96xf32, #tpu.memory_space<vmem>>, vector<1x96xf32>
    %5 = vector.broadcast %4 : vector<1x96xf32> to vector<8x96xf32>
    %6 = arith.addf %3, %5 : vector<8x96xf32>
    %7 = vector.extract_strided_slice %6 {offsets = [0, 0], sizes = [8, 8], strides = [1, 1]} : vector<8x96xf32> to vector<8x8xf32>
    %8 = arith.truncf %7 : vector<8x8xf32> to vector<8x8xbf16>
    %9 = vector.extract_strided_slice %6 {offsets = [0, 32], sizes = [8, 8], strides = [1, 1]} : vector<8x96xf32> to vector<8x8xf32>
    %10 = arith.truncf %9 : vector<8x8xf32> to vector<8x8xbf16>
    %11 = vector.extract_strided_slice %6 {offsets = [0, 64], sizes = [8, 8], strides = [1, 1]} : vector<8x96xf32> to vector<8x8xf32>
    %12 = arith.truncf %11 : vector<8x8xf32> to vector<8x8xbf16>
    %cst_5 = arith.constant dense<0.000000e+00> : vector<8x8xf32>
    %13 = tpu.matmul %8, %10, %cst_5 {dimension_numbers = #tpu.dot_dimension_numbers<[1], [1], [0], [0], [0, 0, 1, 0], [], []>} : vector<8x8xbf16>, vector<8x8xbf16>, vector<8x8xf32> -> vector<8x8xf32>
    %cst_6 = arith.constant dense<0xFF800000> : vector<8xf32>
    %14 = vector.multi_reduction <maximumf>, %13, %cst_6 [1] : vector<8x8xf32> to vector<8xf32>
    %15 = vector.shape_cast %14 : vector<8xf32> to vector<8x1xf32>
    %16 = vector.broadcast %15 : vector<8x1xf32> to vector<8x8xf32>
    %17 = arith.subf %13, %16 : vector<8x8xf32>
    %18 = math.exp %17 : vector<8x8xf32>
    %cst_7 = arith.constant dense<0.000000e+00> : vector<8xf32>
    %19 = vector.multi_reduction <add>, %18, %cst_7 [1] : vector<8x8xf32> to vector<8xf32>
    %20 = vector.shape_cast %19 : vector<8xf32> to vector<8x1xf32>
    %21 = tpu.reciprocal %20 {approx = true} : vector<8x1xf32> -> vector<8x1xf32>
    %22 = vector.broadcast %21 : vector<8x1xf32> to vector<8x8xf32>
    %23 = arith.mulf %18, %22 : vector<8x8xf32>
    %24 = arith.truncf %23 : vector<8x8xf32> to vector<8x8xbf16>
    %cst_8 = arith.constant dense<0.000000e+00> : vector<8x8xf32>
    %25 = tpu.matmul %24, %12, %cst_8 {dimension_numbers = #tpu.dot_dimension_numbers<[1], [0], [0], [1], [0, 0, 1, 1], [], []>} : vector<8x8xbf16>, vector<8x8xbf16>, vector<8x8xf32> -> vector<8x8xf32>
    %c0_9 = arith.constant 0 : index
    %c0_10 = arith.constant 0 : index
    %26 = vector.load %arg15[%c0_9, %c0_10] : memref<8x32xf32, #tpu.memory_space<vmem>>, vector<8x8xf32>
    tpu.vector_store %arg15[%c0_9, %c0_10], %25 {strides = array<i32>} : memref<8x32xf32, #tpu.memory_space<vmem>>, vector<8x8xf32>,
    %27 = vector.extract_strided_slice %6 {offsets = [0, 8], sizes = [8, 8], strides = [1, 1]} : vector<8x96xf32> to vector<8x8xf32>
    %28 = arith.truncf %27 : vector<8x8xf32> to vector<8x8xbf16>
    %29 = vector.extract_strided_slice %6 {offsets = [0, 40], sizes = [8, 8], strides = [1, 1]} : vector<8x96xf32> to vector<8x8xf32>
    %30 = arith.truncf %29 : vector<8x8xf32> to vector<8x8xbf16>
    %31 = vector.extract_strided_slice %6 {offsets = [0, 72], sizes = [8, 8], strides = [1, 1]} : vector<8x96xf32> to vector<8x8xf32>
    %32 = arith.truncf %31 : vector<8x8xf32> to vector<8x8xbf16>
    %cst_11 = arith.constant dense<0.000000e+00> : vector<8x8xf32>
    %33 = tpu.matmul %28, %30, %cst_11 {dimension_numbers = #tpu.dot_dimension_numbers<[1], [1], [0], [0], [0, 0, 1, 0], [], []>} : vector<8x8xbf16>, vector<8x8xbf16>, vector<8x8xf32> -> vector<8x8xf32>
    %cst_12 = arith.constant dense<0xFF800000> : vector<8xf32>
    %34 = vector.multi_reduction <maximumf>, %33, %cst_12 [1] : vector<8x8xf32> to vector<8xf32>
    %35 = vector.shape_cast %34 : vector<8xf32> to vector<8x1xf32>
    %36 = vector.broadcast %35 : vector<8x1xf32> to vector<8x8xf32>
    %37 = arith.subf %33, %36 : vector<8x8xf32>
    %38 = math.exp %37 : vector<8x8xf32>
    %cst_13 = arith.constant dense<0.000000e+00> : vector<8xf32>
    %39 = vector.multi_reduction <add>, %38, %cst_13 [1] : vector<8x8xf32> to vector<8xf32>
    %40 = vector.shape_cast %39 : vector<8xf32> to vector<8x1xf32>
    %41 = tpu.reciprocal %40 {approx = true} : vector<8x1xf32> -> vector<8x1xf32>
    %42 = vector.broadcast %41 : vector<8x1xf32> to vector<8x8xf32>
    %43 = arith.mulf %38, %42 : vector<8x8xf32>
    %44 = arith.truncf %43 : vector<8x8xf32> to vector<8x8xbf16>
    %cst_14 = arith.constant dense<0.000000e+00> : vector<8x8xf32>
    %45 = tpu.matmul %44, %32, %cst_14 {dimension_numbers = #tpu.dot_dimension_numbers<[1], [0], [0], [1], [0, 0, 1, 1], [], []>} : vector<8x8xbf16>, vector<8x8xbf16>, vector<8x8xf32> -> vector<8x8xf32>
    %c0_15 = arith.constant 0 : index
    %c8 = arith.constant 8 : index
    %46 = vector.load %arg15[%c0_15, %c8] : memref<8x32xf32, #tpu.memory_space<vmem>>, vector<8x8xf32>
    tpu.vector_store %arg15[%c0_15, %c8], %45 {strides = array<i32>} : memref<8x32xf32, #tpu.memory_space<vmem>>, vector<8x8xf32>,
    %47 = vector.extract_strided_slice %6 {offsets = [0, 16], sizes = [8, 8], strides = [1, 1]} : vector<8x96xf32> to vector<8x8xf32>
    %48 = arith.truncf %47 : vector<8x8xf32> to vector<8x8xbf16>
    %49 = vector.extract_strided_slice %6 {offsets = [0, 48], sizes = [8, 8], strides = [1, 1]} : vector<8x96xf32> to vector<8x8xf32>
    %50 = arith.truncf %49 : vector<8x8xf32> to vector<8x8xbf16>
    %51 = vector.extract_strided_slice %6 {offsets = [0, 80], sizes = [8, 8], strides = [1, 1]} : vector<8x96xf32> to vector<8x8xf32>
    %52 = arith.truncf %51 : vector<8x8xf32> to vector<8x8xbf16>
    %cst_16 = arith.constant dense<0.000000e+00> : vector<8x8xf32>
    %53 = tpu.matmul %48, %50, %cst_16 {dimension_numbers = #tpu.dot_dimension_numbers<[1], [1], [0], [0], [0, 0, 1, 0], [], []>} : vector<8x8xbf16>, vector<8x8xbf16>, vector<8x8xf32> -> vector<8x8xf32>
    %cst_17 = arith.constant dense<0xFF800000> : vector<8xf32>
    %54 = vector.multi_reduction <maximumf>, %53, %cst_17 [1] : vector<8x8xf32> to vector<8xf32>
    %55 = vector.shape_cast %54 : vector<8xf32> to vector<8x1xf32>
    %56 = vector.broadcast %55 : vector<8x1xf32> to vector<8x8xf32>
    %57 = arith.subf %53, %56 : vector<8x8xf32>
    %58 = math.exp %57 : vector<8x8xf32>
    %cst_18 = arith.constant dense<0.000000e+00> : vector<8xf32>
    %59 = vector.multi_reduction <add>, %58, %cst_18 [1] : vector<8x8xf32> to vector<8xf32>
    %60 = vector.shape_cast %59 : vector<8xf32> to vector<8x1xf32>
    %61 = tpu.reciprocal %60 {approx = true} : vector<8x1xf32> -> vector<8x1xf32>
    %62 = vector.broadcast %61 : vector<8x1xf32> to vector<8x8xf32>
    %63 = arith.mulf %58, %62 : vector<8x8xf32>
    %64 = arith.truncf %63 : vector<8x8xf32> to vector<8x8xbf16>
    %cst_19 = arith.constant dense<0.000000e+00> : vector<8x8xf32>
    %65 = tpu.matmul %64, %52, %cst_19 {dimension_numbers = #tpu.dot_dimension_numbers<[1], [0], [0], [1], [0, 0, 1, 1], [], []>} : vector<8x8xbf16>, vector<8x8xbf16>, vector<8x8xf32> -> vector<8x8xf32>
    %c0_20 = arith.constant 0 : index
    %c16 = arith.constant 16 : index
    %66 = vector.load %arg15[%c0_20, %c16] : memref<8x32xf32, #tpu.memory_space<vmem>>, vector<8x8xf32>
    tpu.vector_store %arg15[%c0_20, %c16], %65 {strides = array<i32>} : memref<8x32xf32, #tpu.memory_space<vmem>>, vector<8x8xf32>,
    %67 = vector.extract_strided_slice %6 {offsets = [0, 24], sizes = [8, 8], strides = [1, 1]} : vector<8x96xf32> to vector<8x8xf32>
    %68 = arith.truncf %67 : vector<8x8xf32> to vector<8x8xbf16>
    %69 = vector.extract_strided_slice %6 {offsets = [0, 56], sizes = [8, 8], strides = [1, 1]} : vector<8x96xf32> to vector<8x8xf32>
    %70 = arith.truncf %69 : vector<8x8xf32> to vector<8x8xbf16>
    %71 = vector.extract_strided_slice %6 {offsets = [0, 88], sizes = [8, 8], strides = [1, 1]} : vector<8x96xf32> to vector<8x8xf32>
    %72 = arith.truncf %71 : vector<8x8xf32> to vector<8x8xbf16>
    %cst_21 = arith.constant dense<0.000000e+00> : vector<8x8xf32>
    %73 = tpu.matmul %68, %70, %cst_21 {dimension_numbers = #tpu.dot_dimension_numbers<[1], [1], [0], [0], [0, 0, 1, 0], [], []>} : vector<8x8xbf16>, vector<8x8xbf16>, vector<8x8xf32> -> vector<8x8xf32>
    %cst_22 = arith.constant dense<0xFF800000> : vector<8xf32>
    %74 = vector.multi_reduction <maximumf>, %73, %cst_22 [1] : vector<8x8xf32> to vector<8xf32>
    %75 = vector.shape_cast %74 : vector<8xf32> to vector<8x1xf32>
    %76 = vector.broadcast %75 : vector<8x1xf32> to vector<8x8xf32>
    %77 = arith.subf %73, %76 : vector<8x8xf32>
    %78 = math.exp %77 : vector<8x8xf32>
    %cst_23 = arith.constant dense<0.000000e+00> : vector<8xf32>
    %79 = vector.multi_reduction <add>, %78, %cst_23 [1] : vector<8x8xf32> to vector<8xf32>
    %80 = vector.shape_cast %79 : vector<8xf32> to vector<8x1xf32>
    %81 = tpu.reciprocal %80 {approx = true} : vector<8x1xf32> -> vector<8x1xf32>
    %82 = vector.broadcast %81 : vector<8x1xf32> to vector<8x8xf32>
    %83 = arith.mulf %78, %82 : vector<8x8xf32>
    %84 = arith.truncf %83 : vector<8x8xf32> to vector<8x8xbf16>
    %cst_24 = arith.constant dense<0.000000e+00> : vector<8x8xf32>
    %85 = tpu.matmul %84, %72, %cst_24 {dimension_numbers = #tpu.dot_dimension_numbers<[1], [0], [0], [1], [0, 0, 1, 1], [], []>} : vector<8x8xbf16>, vector<8x8xbf16>, vector<8x8xf32> -> vector<8x8xf32>
    %c0_25 = arith.constant 0 : index
    %c24 = arith.constant 24 : index
    %86 = vector.load %arg15[%c0_25, %c24] : memref<8x32xf32, #tpu.memory_space<vmem>>, vector<8x8xf32>
    tpu.vector_store %arg15[%c0_25, %c24], %85 {strides = array<i32>} : memref<8x32xf32, #tpu.memory_space<vmem>>, vector<8x8xf32>,
    %c0_26 = arith.constant 0 : index
    %c0_27 = arith.constant 0 : index
    %87 = vector.load %arg15[%c0_26, %c0_27] : memref<8x32xf32, #tpu.memory_space<vmem>>, vector<8x32xf32>
    %88 = arith.truncf %87 : vector<8x32xf32> to vector<8x32xbf16>
    %c0_28 = arith.constant 0 : index
    %c0_29 = arith.constant 0 : index
    %89 = vector.load %arg4[%c0_28, %c0_29] : memref<32x32xbf16, #tpu.memory_space<vmem>>, vector<32x32xbf16>
    %cst_30 = arith.constant dense<0.000000e+00> : vector<8x32xf32>
    %90 = tpu.matmul %88, %89, %cst_30 {dimension_numbers = #tpu.dot_dimension_numbers<[1], [0], [0], [1], [0, 0, 1, 1], [], []>} : vector<8x32xbf16>, vector<32x32xbf16>, vector<8x32xf32> -> vector<8x32xf32>
    %c0_31 = arith.constant 0 : index
    %c0_32 = arith.constant 0 : index
    %91 = vector.load %arg5[%c0_31, %c0_32] : memref<1x32xf32, #tpu.memory_space<vmem>>, vector<1x32xf32>
    %92 = vector.broadcast %91 : vector<1x32xf32> to vector<8x32xf32>
    %93 = arith.addf %90, %92 : vector<8x32xf32>
    %94 = arith.addf %0, %93 : vector<8x32xf32>
    %cst_33 = arith.constant dense<0.000000e+00> : vector<8xf32>
    %95 = vector.multi_reduction <add>, %94, %cst_33 [1] : vector<8x32xf32> to vector<8xf32>
    %96 = vector.shape_cast %95 : vector<8xf32> to vector<8x1xf32>
    %cst_34 = arith.constant 3.200000e+01 : f32
    %97 = vector.broadcast %cst_34 : f32 to vector<8x1xf32>
    %98 = arith.divf %96, %97 : vector<8x1xf32>
    %99 = vector.broadcast %98 : vector<8x1xf32> to vector<8x32xf32>
    %100 = arith.subf %94, %99 : vector<8x32xf32>
    %101 = arith.mulf %100, %100 : vector<8x32xf32>
    %cst_35 = arith.constant dense<0.000000e+00> : vector<8xf32>
    %102 = vector.multi_reduction <add>, %101, %cst_35 [1] : vector<8x32xf32> to vector<8xf32>
    %103 = vector.shape_cast %102 : vector<8xf32> to vector<8x1xf32>
    %cst_36 = arith.constant 3.200000e+01 : f32
    %104 = vector.broadcast %cst_36 : f32 to vector<8x1xf32>
    %105 = arith.divf %103, %104 : vector<8x1xf32>
    %106 = vector.broadcast %98 : vector<8x1xf32> to vector<8x32xf32>
    %107 = arith.subf %94, %106 : vector<8x32xf32>
    %cst_37 = arith.constant 9.99999974E-6 : f32
    %108 = vector.broadcast %cst_37 : f32 to vector<8x1xf32>
    %109 = arith.addf %105, %108 : vector<8x1xf32>
    %110 = math.rsqrt %109 : vector<8x1xf32>
    %111 = vector.broadcast %110 : vector<8x1xf32> to vector<8x32xf32>
    %112 = arith.mulf %107, %111 : vector<8x32xf32>
    %c0_38 = arith.constant 0 : index
    %c0_39 = arith.constant 0 : index
    %113 = vector.load %arg10[%c0_38, %c0_39] : memref<1x32xf32, #tpu.memory_space<vmem>>, vector<1x32xf32>
    %114 = vector.broadcast %113 : vector<1x32xf32> to vector<8x32xf32>
    %115 = arith.mulf %112, %114 : vector<8x32xf32>
    %c0_40 = arith.constant 0 : index
    %c0_41 = arith.constant 0 : index
    %116 = vector.load %arg11[%c0_40, %c0_41] : memref<1x32xf32, #tpu.memory_space<vmem>>, vector<1x32xf32>
    %117 = vector.broadcast %116 : vector<1x32xf32> to vector<8x32xf32>
    %118 = arith.addf %115, %117 : vector<8x32xf32>
    %119 = arith.truncf %118 : vector<8x32xf32> to vector<8x32xbf16>
    %c0_42 = arith.constant 0 : index
    %c0_43 = arith.constant 0 : index
    %120 = vector.load %arg6[%c0_42, %c0_43] : memref<32x64xbf16, #tpu.memory_space<vmem>>, vector<32x64xbf16>
    %cst_44 = arith.constant dense<0.000000e+00> : vector<8x64xf32>
    %121 = tpu.matmul %119, %120, %cst_44 {dimension_numbers = #tpu.dot_dimension_numbers<[1], [0], [0], [1], [0, 0, 1, 1], [], []>} : vector<8x32xbf16>, vector<32x64xbf16>, vector<8x64xf32> -> vector<8x64xf32>
    %c0_45 = arith.constant 0 : index
    %c0_46 = arith.constant 0 : index
    %122 = vector.load %arg7[%c0_45, %c0_46] : memref<1x64xf32, #tpu.memory_space<vmem>>, vector<1x64xf32>
    %123 = vector.broadcast %122 : vector<1x64xf32> to vector<8x64xf32>
    %124 = arith.addf %121, %123 : vector<8x64xf32>
    %cst_47 = arith.constant 0.000000e+00 : f32
    %125 = vector.broadcast %cst_47 : f32 to vector<8x64xf32>
    %126 = arith.maximumf %124, %125 : vector<8x64xf32>
    %127 = arith.truncf %126 : vector<8x64xf32> to vector<8x64xbf16>
    %c0_48 = arith.constant 0 : index
    %c0_49 = arith.constant 0 : index
    %128 = vector.load %arg8[%c0_48, %c0_49] : memref<64x32xbf16, #tpu.memory_space<vmem>>, vector<64x32xbf16>
    %cst_50 = arith.constant dense<0.000000e+00> : vector<8x32xf32>
    %129 = tpu.matmul %127, %128, %cst_50 {dimension_numbers = #tpu.dot_dimension_numbers<[1], [0], [0], [1], [0, 0, 1, 1], [], []>} : vector<8x64xbf16>, vector<64x32xbf16>, vector<8x32xf32> -> vector<8x32xf32>
    %c0_51 = arith.constant 0 : index
    %c0_52 = arith.constant 0 : index
    %130 = vector.load %arg9[%c0_51, %c0_52] : memref<1x32xf32, #tpu.memory_space<vmem>>, vector<1x32xf32>
    %131 = vector.broadcast %130 : vector<1x32xf32> to vector<8x32xf32>
    %132 = arith.addf %129, %131 : vector<8x32xf32>
    %133 = arith.addf %118, %132 : vector<8x32xf32>
    %cst_53 = arith.constant dense<0.000000e+00> : vector<8xf32>
    %134 = vector.multi_reduction <add>, %133, %cst_53 [1] : vector<8x32xf32> to vector<8xf32>
    %135 = vector.shape_cast %134 : vector<8xf32> to vector<8x1xf32>
    %cst_54 = arith.constant 3.200000e+01 : f32
    %136 = vector.broadcast %cst_54 : f32 to vector<8x1xf32>
    %137 = arith.divf %135, %136 : vector<8x1xf32>
    %138 = vector.broadcast %137 : vector<8x1xf32> to vector<8x32xf32>
    %139 = arith.subf %133, %138 : vector<8x32xf32>
    %140 = arith.mulf %139, %139 : vector<8x32xf32>
    %cst_55 = arith.constant dense<0.000000e+00> : vector<8xf32>
    %141 = vector.multi_reduction <add>, %140, %cst_55 [1] : vector<8x32xf32> to vector<8xf32>
    %142 = vector.shape_cast %141 : vector<8xf32> to vector<8x1xf32>
    %cst_56 = arith.constant 3.200000e+01 : f32
    %143 = vector.broadcast %cst_56 : f32 to vector<8x1xf32>
    %144 = arith.divf %142, %143 : vector<8x1xf32>
    %145 = vector.broadcast %137 : vector<8x1xf32> to vector<8x32xf32>
    %146 = arith.subf %133, %145 : vector<8x32xf32>
    %cst_57 = arith.constant 9.99999974E-6 : f32
    %147 = vector.broadcast %cst_57 : f32 to vector<8x1xf32>
    %148 = arith.addf %144, %147 : vector<8x1xf32>
    %149 = math.rsqrt %148 : vector<8x1xf32>
    %150 = vector.broadcast %149 : vector<8x1xf32> to vector<8x32xf32>
    %151 = arith.mulf %146, %150 : vector<8x32xf32>
    %c0_58 = arith.constant 0 : index
    %c0_59 = arith.constant 0 : index
    %152 = vector.load %arg12[%c0_58, %c0_59] : memref<1x32xf32, #tpu.memory_space<vmem>>, vector<1x32xf32>
    %153 = vector.broadcast %152 : vector<1x32xf32> to vector<8x32xf32>
    %154 = arith.mulf %151, %153 : vector<8x32xf32>
    %c0_60 = arith.constant 0 : index
    %c0_61 = arith.constant 0 : index
    %155 = vector.load %arg13[%c0_60, %c0_61] : memref<1x32xf32, #tpu.memory_space<vmem>>, vector<1x32xf32>
    %156 = vector.broadcast %155 : vector<1x32xf32> to vector<8x32xf32>
    %157 = arith.addf %154, %156 : vector<8x32xf32>
    %c0_62 = arith.constant 0 : index
    %c0_63 = arith.constant 0 : index
    %158 = vector.load %arg14[%c0_62, %c0_63] : memref<8x32xf32, #tpu.memory_space<vmem>>, vector<8x32xf32>
    tpu.vector_store %arg14[%c0_62, %c0_63], %157 {strides = array<i32>} : memref<8x32xf32, #tpu.memory_space<vmem>>, vector<8x32xf32>,
    return
  }
  func.func @transform_0(%arg0: i32) -> (i32, i32) {
    %c0_i32 = arith.constant 0 : i32
    %c0_i32_0 = arith.constant 0 : i32
    return %arg0, %c0_i32 : i32, i32
  }
  func.func @transform_1(%arg0: i32) -> (i32, i32) {
    %c0_i32 = arith.constant 0 : i32
    %c0_i32_0 = arith.constant 0 : i32
    %c0_i32_1 = arith.constant 0 : i32
    return %c0_i32, %c0_i32_0 : i32, i32
  }
  func.func @transform_2(%arg0: i32) -> (i32, i32) {
    %c0_i32 = arith.constant 0 : i32
    %c0_i32_0 = arith.constant 0 : i32
    %c0_i32_1 = arith.constant 0 : i32
    return %c0_i32, %c0_i32_0 : i32, i32
  }
  func.func @transform_3(%arg0: i32) -> (i32, i32) {
    %c0_i32 = arith.constant 0 : i32
    %c0_i32_0 = arith.constant 0 : i32
    %c0_i32_1 = arith.constant 0 : i32
    return %c0_i32, %c0_i32_0 : i32, i32
  }
  func.func @transform_4(%arg0: i32) -> (i32, i32) {
    %c0_i32 = arith.constant 0 : i32
    %c0_i32_0 = arith.constant 0 : i32
    %c0_i32_1 = arith.constant 0 : i32
    return %c0_i32, %c0_i32_0 : i32, i32
  }
  func.func @transform_5(%arg0: i32) -> (i32, i32) {
    %c0_i32 = arith.constant 0 : i32
    %c0_i32_0 = arith.constant 0 : i32
    %c0_i32_1 = arith.constant 0 : i32
    return %c0_i32, %c0_i32_0 : i32, i32
  }
  func.func @transform_6(%arg0: i32) -> (i32, i32) {
    %c0_i32 = arith.constant 0 : i32
    %c0_i32_0 = arith.constant 0 : i32
    %c0_i32_1 = arith.constant 0 : i32
    return %c0_i32, %c0_i32_0 : i32, i32
  }
  func.func @transform_7(%arg0: i32) -> (i32, i32) {
    %c0_i32 = arith.constant 0 : i32
    %c0_i32_0 = arith.constant 0 : i32
    %c0_i32_1 = arith.constant 0 : i32
    return %c0_i32, %c0_i32_0 : i32, i32
  }
  func.func @transform_8(%arg0: i32) -> (i32, i32) {
    %c0_i32 = arith.constant 0 : i32
    %c0_i32_0 = arith.constant 0 : i32
    %c0_i32_1 = arith.constant 0 : i32
    return %c0_i32, %c0_i32_0 : i32, i32
  }
  func.func @transform_9(%arg0: i32) -> (i32, i32) {
    %c0_i32 = arith.constant 0 : i32
    %c0_i32_0 = arith.constant 0 : i32
    %c0_i32_1 = arith.constant 0 : i32
    return %c0_i32, %c0_i32_0 : i32, i32
  }
  func.func @transform_10(%arg0: i32) -> (i32, i32) {
    %c0_i32 = arith.constant 0 : i32
    %c0_i32_0 = arith.constant 0 : i32
    %c0_i32_1 = arith.constant 0 : i32
    return %c0_i32, %c0_i32_0 : i32, i32
  }
  func.func @transform_11(%arg0: i32) -> (i32, i32) {
    %c0_i32 = arith.constant 0 : i32
    %c0_i32_0 = arith.constant 0 : i32
    %c0_i32_1 = arith.constant 0 : i32
    return %c0_i32, %c0_i32_0 : i32, i32
  }
  func.func @transform_12(%arg0: i32) -> (i32, i32) {
    %c0_i32 = arith.constant 0 : i32
    %c0_i32_0 = arith.constant 0 : i32
    %c0_i32_1 = arith.constant 0 : i32
    return %c0_i32, %c0_i32_0 : i32, i32
  }
  func.func @transform_13(%arg0: i32) -> (i32, i32) {
    %c0_i32 = arith.constant 0 : i32
    %c0_i32_0 = arith.constant 0 : i32
    return %arg0, %c0_i32 : i32, i32
  }
}

</mosaic_0001>

<bundles_post_ra>
// kernel: tpu_custom_call.1
= control target key start
LH: loop header
LB: loop body
LE: loop exit
PB: predicated region body
PF: predicated region fallthrough
CT: control target
= control target key end

     0   :  { %s2032_s0 = inlined_call_operand.vmem [shape: f32[16,32], index: 0, kind: input, shape index: {}]   ;;  %s2033_s1 = inlined_call_operand.vmem [shape: bf16[32,96], index: 1, kind: input, shape index: {}]   ;;  %s2034_s2 = inlined_call_operand.vmem [shape: f32[1,96], index: 2, kind: input, shape index: {}]   ;;  %s2035_s3 = inlined_call_operand.vmem [shape: bf16[32,32], index: 3, kind: input, shape index: {}]   ;;  %s2036_s4 = inlined_call_operand.vmem [shape: f32[1,32], index: 4, kind: input, shape index: {}]   ;;  %s2037_s5 = inlined_call_operand.hbm [shape: bf16[32,64], index: 5, kind: input, shape index: {}]   ;;  %s2038_s6 = inlined_call_operand.vmem [shape: f32[1,64], index: 6, kind: input, shape index: {}]   ;;  %s2039_s7 = inlined_call_operand.vmem [shape: bf16[64,32], index: 7, kind: input, shape index: {}]   ;;  %s2040_s8 = inlined_call_operand.vmem [shape: f32[1,32], index: 8, kind: input, shape index: {}]   ;;  %s2041_s9 = inlined_call_operand.vmem [shape: f32[1,32], index: 9, kind: input, shape index: {}]   ;;  %s2042_s10 = inlined_call_operand.vmem [shape: f32[1,32], index: 10, kind: input, shape index: {}]   ;;  %s2043_s11 = inlined_call_operand.vmem [shape: f32[1,32], index: 11, kind: input, shape index: {}]   ;;  %s2044_s12 = inlined_call_operand.vmem [shape: f32[1,32], index: 12, kind: input, shape index: {}]   ;;  %s2045_s13 = inlined_call_operand.hbm [shape: f32[16,32], index: 13, kind: output, shape index: {}]  }
   0x1   :  { %2046 = sst [smem:[#allocation9_spill]] %s2032_s0 }
   0x2   :  { %2047 = sst [smem:[#allocation10_spill]] %s2033_s1 }
   0x3   :  { %2048 = sst [smem:[#allocation11_spill]] %s2034_s2 }
   0x4   :  { %2049 = sst [smem:[#allocation12_spill]] %s2035_s3 }
   0x5   :  { %2050 = sst [smem:[#allocation13_spill]] %s2037_s5 }
   0x6   :  { %18 = vsyncpa [#allocation4], 0 }
   0x7   :  { %19 = vsyncpa [#allocation5], 0 }
   0x8   :  { %21 = vsyncpa [#allocation5 + $0x1], 0  ;;  %s1785_s25 = smov 0   ;;  %s1787_s26 = smov 0  }
   0x9   :  { %s1789_s27 = smov 0   ;;  %s1791_s28 = smov 0  }
   0xa LB: > { %s1806_s29 = sadd.s32 4294967295, %s1693_s28   ;;  %s1349_s30 = sadd.s32 4294967294, %s1693_s28   ;;  %s1693_s28 = sphi %s1791_s28, %s2063_s28   ;;  %s1689_s27 = sphi %s1789_s27, %s2062_s27   ;;  %s1685_s26 = sphi %s1787_s26, %s2061_s26   ;;  %s1681_s25 = sphi %s1785_s25, %s2060_s25  }
   0xb   : > { %s1810_s14 = sadd.s32 1, %s1693_s28   ;;  %s312_s15 = sadd.s32 1, %s1689_s27 }
   0xc   : > { %s309_s16 = ssub.s32 %s1693_s28, %s1810_s14  ;;  %p322_p0 = scmp.ne.s32.totalorder %s1689_s27, %s1685_s26 }
   0xd   : > { %p310_p1 = scmp.eq.s32.totalorder %s309_s16, 0  ;;  %p323_p2 = scmp.eq.s32.totalorder %s1806_s29, 1 }
   0xe   : > { %p328_p3 = scmp.ne.s32.totalorder %s1685_s26, %s1681_s25  ;;  %p329_p4 = scmp.eq.s32.totalorder %s1349_s30, 1 }
   0xf   : > { %s1821_s17 = scalar_select %p310_p1, %s1689_s27, %s312_s15  }
  0x10   : > { %p1823_p5 = por %p323_p2, %p322_p0  ;;  %p1827_p6 = por %p329_p4, %p328_p3 }
  0x11   : > { %p1350_p7 = scmp.ge.s32.totalorder %s1693_s28, 1  ;;  %p336_p8 = scmp.lt.s32.totalorder %s1693_s28, 3 }
  0x12   : > { %s2052_s19 = scalar_select %p1827_p6, 1, 0 }
  0x13   : > { %p1519_p9 = scmp.eq.s32.totalorder %s1806_s29, 0  ;;  %p1834_p10 = pnand %p1350_p7, %p336_p8 }
  0x14   : > { %s1695_s21 = smov [#allocation3]  }
  0x15   : > { %s360_s22 = sshll.u32 %s1695_s21, 4  ;;  %p1511_p11 = pneg %p1834_p10  ;;  %s361_s22 = int_to_ptr.vmem [resolvable:$true] %s360_s22 }
  0x16   : > { %s1614_s23 = scalar_lea.vmem %s361_s22, 256  ;;  %p1622_p3 = scmp.lt.s32.totalorder %s361_s22, %s361_s22 }
  0x17   : > { %p1512_p12 = pnand %p1519_p9, %p1511_p11  ;;  %p1615_p0 = scmp.ne.s32.totalorder %s361_s22, %s1614_s23 }
  0x18   : > { %p1623_p4 = scmp.lt.s32.totalorder %s1614_s23, %s1614_s23 }
  0x19   : > { %p1605_p13 = pneg %p1512_p12 }
  0x1a   : > { %p1624_p6 = por %p1623_p4, %p1622_p3 }
  0x1b   : > { %p1617_p1 = pnand %p1615_p0, %p1605_p13 }
  0x1d   : > { %p1618_p2 = pneg %p1617_p1 }
  0x1f   : > { %p1625_p7 = pnand %p1624_p6, %p1618_p2 }
  0x21   : > { %1628 = shalt.err (!%p1625_p7)
}
  0x22   : > { %s1696_s24 = smov 64   ;;  %s1697_s30 = smov 4  }
  0x23   : > { %s2054_s5 = sld [smem:[#allocation13_spill]] }
  0x25   : > { %404 = sbr.rel (%p1834_p10) target bundleno = 2488 (0x9b8), region = 72 }
  0x29   : > { %1514 = dma.hbm_to_vmem [thread:$0]  (!%p1512_p12), %s2054_s5, 256, %s361_s22, [#allocation4], %s1696_s24, %s1696_s24, %s1697_s30  }
  0x2a   : > { %1672 = dma.done.wait (%p1519_p9), [#allocation4], 256  }
  0x2b   : > { %1674 = vsyncadd (%p1519_p9), [#allocation4], 4294967040  ;;  %p447_p8 = scmp.lt.s32.totalorder %s1806_s29, 1  ;;  %v1698_v0 = vmov 0.0   ;;  %vm1699_vm0 = vmmov 0   ;;  %s2055_s0 = sld [smem:[#allocation9_spill]] }
  0x2c   : > { %1421 = vmatprep.subr.bf16.mxu0 %v1698_v0  ;;  %1425 = vmatprep.mubr.msk.bf16.mxu0 %vm1699_vm0, %v1698_v0  ;;  %s2056_s1 = sld [smem:[#allocation10_spill]]  ;;  %vm477_vm1 = vcmask 261120   ;;  %s1700_s5 = smov 120   ;;  %vm525_vm2 = vcmask 64512   ;;  %vm589_vm3 = vcmask 1043456   ;;  %vm748_vm4 = vcmask 130112  }
  0x2d   : > { %s448_s21 = scalar_select %p447_p8, %s1806_s29, 1  ;;  %1429 = vmatprep.subr.bf16.mxu1 %v1698_v0  ;;  %1431 = vmatprep.mubr.msk.bf16.mxu1 %vm1699_vm0, %v1698_v0  ;;  %vm864_vm5 = vcmask 195712   ;;  %vm980_vm6 = vcmask 261312   ;;  %vm1189_vm7 = vcmask 523264  }
  0x2e   : > { %s2057_s2 = sld [smem:[#allocation11_spill]]  ;;  %s1701_s22 = smov 96  }
  0x2f   : > { %s1356_s20 = sshll.u32 %s448_s21, 3  ;;  %s1702_s23 = smov 80  }
  0x30   : > { %s1704_s30 = smov 72   ;;  %s1705_s15 = smov 112  }
  0x31   : > { %s450_s24 = scalar_lea.vmem %s2055_s0, %s1356_s20  ;;  %s1706_s16 = smov 104  }
  0x32   : > { %v1573_v1 = vld [vmem:[%s2056_s1 + $0x8] sm:$0xff]   ;;  %v1574_v2 = vld [vmem:[%s2056_s1] sm:$0xff]   ;;  %s1707_s21 = smov 56   ;;  %s1708_s20 = smov 64  }
  0x33   : > { %1422 = vmatpush3.bf16.msra.mxu0 %v1573_v1  ;;  %v1868_v3 = vld [vmem:[%s450_s24] sm:$0xff]  ;;  %s1703_s24 = smov 88   ;;  %s2058_s3 = sld [smem:[#allocation12_spill]] }
  0x34   : > { %1423 = vmatprep.subr.bf16.mxu0 %v1698_v0  ;;  %v453_v4 = vpack.c.bf16 %v1868_v3, %v1868_v3  ;;  %v1357_v5 = vld [vmem:[%s2057_s2] ss:$0 sm:$0xff] }
  0x37   : > { %1424 = vmatpush3.bf16.msra.mxu0 %v1574_v2 }
  0x38   : > { %1435 = vmatprep.subr.bf16.mxu0 %v1698_v0 }
  0x3a   : > { %1426 = vmatmul.mubr.msk.bf16.vlgmr.msra.gmra.mxu0 %vm477_vm1, %v453_v4 }
  0x3b   : > { %1437 = vmatprep.mubr.msk.bf16.mxu0 %vm1699_vm0, %v1698_v0 }
  0xfa   : > { %v515_v6 = vpop.f32.mrf.mxu0 }
  0xfb   : > { %v516_v7 = vadd.f32 %v1357_v5, %v515_v6 }
  0xfc   : > { %v1427_v8 = vpop.f32.mrf.mxu0 }
  0xfd   : > { %v1880_v9 = vpack.c.bf16 %v516_v7, %v516_v7 }
  0xfe   : > { %v518_v10 = vpop.f32.mrf.mxu0 }
  0xff   : > { %634 = vrot.lane.b32.xlu1 %v1880_v9, %s1700_s5  ;;  %523 = vrot.lane.b32.xlu0 %v1880_v9, %s1701_s22  ;;  %s1709_s5 = smov 40   ;;  %s1710_s22 = smov 48  }
 0x100   : > { %v1428_v11 = vpop.f32.mrf.mxu0 }
 0x103   : > { %752 = vrot.lane.b32.xlu1 %v1880_v9, %s1702_s23  ;;  %636 = vrot.lane.b32.xlu0 %v1880_v9, %s1703_s24  ;;  %s1711_s23 = smov 8   ;;  %s1714_s24 = smov [#allocation6]  }
 0x107   : > { %868 = vrot.lane.b32.xlu1 %v1880_v9, %s1704_s30  ;;  %750 = vrot.lane.b32.xlu0 %v1880_v9, %s1705_s15  ;;  %s1633_s30 = sshll.u32 %s1714_s24, 4  ;;  %s1634_s30 = int_to_ptr.vmem [resolvable:$false] %s1633_s30 }
 0x10b   : > { %866 = vrot.lane.b32.xlu0 %v1880_v9, %s1706_s16  ;;  %s1388_s16 = sshll.u32 %s1806_s29, 7  ;;  %s1635_s29 = scalar_lea.vmem %s1634_s30, 256 }
 0x10c   : > { %s1276_s2 = scalar_lea.hbm %s2045_s13, %s1388_s16 }
 0x171   : > { %v524_v12 = vpop.permute.xlu0 %523  ;;  %v635_v15 = vpop.permute.xlu1 %634 }
 0x172   : > { %v530_v13 = vsel %vm525_vm2, %v524_v12, 0 }
 0x173   : > { %1430 = vmatpush3.bf16.xpose.msra.mxu1 %v530_v13 }
 0x174   : > { %1441 = vmatprep.subr.bf16.mxu1 %v1698_v0 }
 0x175   : > { %v637_v14 = vpop.permute.xlu0 %636  ;;  %v753_v17 = vpop.permute.xlu1 %752 }
 0x176   : > { %v642_v16 = vsel %vm525_vm2, %v637_v14, 0  ;;  %v758_v18 = vsel %vm525_vm2, %v753_v17, 0 }
 0x179   : > { %v869_v19 = vpop.permute.xlu1 %868  ;;  %v751_v20 = vpop.permute.xlu0 %750 }
 0x17a   : > { %1432 = vmatmul.mubr.msk.bf16.vlgmr.msra.gmra.mxu1 %vm525_vm2, %v1880_v9  ;;  %v874_v21 = vsel %vm525_vm2, %v869_v19, 0 }
 0x17b   : > { %1442 = vmatpush3.bf16.xpose.msra.mxu1 %v642_v16  ;;  %1443 = vmatprep.mubr.msk.bf16.mxu1 %vm1699_vm0, %v1698_v0 }
 0x17c   : > { %1453 = vmatprep.subr.bf16.mxu1 %v1698_v0 }
 0x17d   : > { %v867_v22 = vpop.permute.xlu0 %866 }
 0x182   : > { %1444 = vmatmul.mubr.msk.bf16.vlgmr.msra.gmra.mxu1 %vm525_vm2, %v635_v15 }
 0x183   : > { %1454 = vmatpush3.bf16.xpose.msra.mxu1 %v758_v18  ;;  %1455 = vmatprep.mubr.msk.bf16.mxu1 %vm1699_vm0, %v1698_v0 }
 0x184   : > { %1465 = vmatprep.subr.bf16.mxu1 %v1698_v0 }
 0x18a   : > { %1456 = vmatmul.mubr.msk.bf16.vlgmr.msra.gmra.mxu1 %vm525_vm2, %v751_v20 }
 0x18b   : > { %1466 = vmatpush3.bf16.xpose.msra.mxu1 %v874_v21  ;;  %1467 = vmatprep.mubr.msk.bf16.mxu1 %vm1699_vm0, %v1698_v0 }
 0x18c   : > { %1477 = vmatprep.subr.bf16.mxu1 %v1698_v0 }
 0x192   : > { %1468 = vmatmul.mubr.msk.bf16.vlgmr.msra.gmra.mxu1 %vm525_vm2, %v867_v22 }
 0x193   : > { %1481 = vmatprep.mubr.msk.bf16.mxu1 %vm1699_vm0, %v1698_v0 }
 0x23a   : > { %v566_v23 = vpop.f32.mrf.mxu1 }
 0x23b   : > { %v572_v24 = vsel %vm525_vm2, %v566_v23, -inf }
 0x23c   : > { %573 = vmax.xlane.f32.xlu1 %v572_v24  ;;  %v1433_v25 = vpop.f32.mrf.mxu1 }
 0x23e   : > { %v569_v26 = vpop.f32.mrf.mxu1 }
 0x240   : > { %v1434_v27 = vpop.f32.mrf.mxu1 }
 0x242   : > { %v678_v28 = vpop.f32.mrf.mxu1 }
 0x243   : > { %v684_v29 = vsel %vm525_vm2, %v678_v28, -inf }
 0x244   : > { %685 = vmax.xlane.f32.xlu0 %v684_v29  ;;  %v1445_v30 = vpop.f32.mrf.mxu1 }
 0x246   : > { %v681_v31 = vpop.f32.mrf.mxu1 }
 0x248   : > { %v1446_v32 = vpop.f32.mrf.mxu1 }
 0x24a   : > { %v794_v33 = vpop.f32.mrf.mxu1 }
 0x24b   : > { %v800_v34 = vsel %vm525_vm2, %v794_v33, -inf }
 0x24c   : > { %801 = vmax.xlane.f32.xlu0 %v800_v34  ;;  %v1457_v35 = vpop.f32.mrf.mxu1 }
 0x24d   : > { %v1576_v35 = vld [vmem:[%s2058_s3] sm:$0xff]  }
 0x24e   : > { %v797_v36 = vpop.f32.mrf.mxu1 }
 0x250   : > { %v1458_v37 = vpop.f32.mrf.mxu1 }
 0x252   : > { %v910_v38 = vpop.f32.mrf.mxu1 }
 0x253   : > { %v916_v39 = vsel %vm525_vm2, %v910_v38, -inf }
 0x254   : > { %917 = vmax.xlane.f32.xlu1 %v916_v39  ;;  %v1469_v40 = vpop.f32.mrf.mxu1 }
 0x256   : > { %v913_v41 = vpop.f32.mrf.mxu1 }
 0x258   : > { %v1470_v42 = vpop.f32.mrf.mxu1 }
 0x2c5   : > { %v574_v43 = vpop.xlane.xlu1 %573 }
 0x2c6   : > { %v575_v44 = vsub.f32 %v566_v23, %v574_v43 }
 0x2c8   : > { %v576_v45 = vmul.f32 1.442695, %v575_v44 }
 0x2ca   : > { %1583 = vpow2.f32 %v576_v45 }
 0x2cd   : > { %v686_v46 = vpop.xlane.xlu0 %685 }
 0x2ce   : > { %v687_v47 = vsub.f32 %v678_v28, %v686_v46 }
 0x2d0   : > { %v688_v48 = vmul.f32 1.442695, %v687_v47 }
 0x2d2   : > { %1585 = vpow2.f32 %v688_v48  ;;  %v1369_v48 = vld [vmem:[%s2036_s4] ss:$0 sm:$0xff] }
 0x2d5   : > { %v802_v49 = vpop.xlane.xlu0 %801 }
 0x2d6   : > { %v803_v50 = vsub.f32 %v794_v33, %v802_v49  ;;  %v1575_v33 = vld [vmem:[%s2058_s3 + $0x8] sm:$0xff]  }
 0x2d7   : > { %v1584_v51 = vpop.eup %1583  ;;  %1478 = vmatpush3.bf16.msra.mxu1 %v1575_v33 }
 0x2d8   : > { %v804_v52 = vmul.f32 1.442695, %v803_v50  ;;  %v578_v53 = vsel %vm525_vm2, %v1584_v51, 0.0  ;;  %1479 = vmatprep.subr.bf16.mxu1 %v1698_v0 }
 0x2d9   : > { %579 = vadd.xlane.f32.xlu0 %v578_v53 }
 0x2da   : > { %1587 = vpow2.f32 %v804_v52 }
 0x2db   : > { %1480 = vmatpush3.bf16.msra.mxu1 %v1576_v35 }
 0x2dc   : > { %1493 = vmatprep.subr.bf16.mxu1 %v1698_v0 }
 0x2dd   : > { %v918_v58 = vpop.xlane.xlu1 %917 }
 0x2de   : > { %v919_v59 = vsub.f32 %v910_v38, %v918_v58 }
 0x2df   : > { %v1586_v54 = vpop.eup %1585 }
 0x2e0   : > { %v690_v55 = vsel %vm525_vm2, %v1586_v54, 0.0  ;;  %v920_v60 = vmul.f32 1.442695, %v919_v59 }
 0x2e1   : > { %691 = vadd.xlane.f32.xlu1 %v690_v55 }
 0x2e2   : > { %1589 = vpow2.f32 %v920_v60 }
 0x2e7   : > { %v1588_v56 = vpop.eup %1587 }
 0x2e8   : > { %v806_v57 = vsel %vm525_vm2, %v1588_v56, 0.0 }
 0x2e9   : > { %807 = vadd.xlane.f32.xlu0 %v806_v57 }
 0x2ef   : > { %v1590_v61 = vpop.eup %1589 }
 0x2f0   : > { %v922_v62 = vsel %vm525_vm2, %v1590_v61, 0.0 }
 0x2f2   : > { %696 = vrot.lane.b32.xlu1 %v1880_v9, %s1707_s21  ;;  %s1712_s21 = smov 16  }
 0x2ff   : > { %584 = vrot.lane.b32.xlu0 %v1880_v9, %s1708_s20  ;;  %s1713_s20 = smov 24  }
 0x303   : > { %928 = vrot.lane.b32.xlu0 %v1880_v9, %s1709_s5  ;;  %s444_s5 = sand.u32 1, %s1685_s26  }
 0x304   : > { %s1265_s3 = scalar_lea.sflag [#allocation5], %s444_s5 }
 0x316   : > { %923 = vadd.xlane.f32.xlu1 %v922_v62  ;;  %v1578_v62 = vld [vmem:[#allocation3] sm:$0xff]  }
 0x327   : > { %812 = vrot.lane.b32.xlu1 %v1880_v9, %s1710_s22  ;;  %s1355_s22 = sshll.u32 %s444_s5, 3 }
 0x362   : > { %v580_v63 = vpop.xlane.xlu0 %579 }
 0x363   : > { %1591 = vrcp.f32 %v580_v63  ;;  %v1580_v63 = vld [vmem:[%s2039_s7 + $0x10] sm:$0xff]  }
 0x36a   : > { %v692_v1 = vpop.xlane.xlu1 %691 }
 0x36b   : > { %1593 = vrcp.f32 %v692_v1 }
 0x36e   : > { %v697_v8 = vpop.permute.xlu1 %696 }
 0x36f   : > { %v702_v12 = vsel %vm589_vm3, %v697_v8, 0  ;;  %v1374_v8 = vld [vmem:[%s2042_s10] ss:$0 sm:$0xff] }
 0x370   : > { %v1592_v2 = vpop.eup %1591 }
 0x371   : > { %v582_v5 = vmul.f32 %v1592_v2, %v1584_v51 }
 0x372   : > { %v808_v4 = vpop.xlane.xlu0 %807 }
 0x373   : > { %v583_v10 = vpack.c.bf16 %v582_v5, %v582_v5  ;;  %1595 = vrcp.f32 %v808_v4 }
 0x376   : > { %v585_v6 = vpop.permute.xlu0 %584 }
 0x377   : > { %v591_v7 = vsel %vm589_vm3, %v585_v6, 0  ;;  %v1373_v6 = vld [vmem:[%s2041_s9] ss:$0 sm:$0xff] }
 0x378   : > { %1436 = vmatpush3.bf16.msra.mxu0 %v591_v7  ;;  %v1594_v11 = vpop.eup %1593 }
 0x379   : > { %1447 = vmatprep.subr.bf16.mxu0 %v1698_v0  ;;  %v694_v9 = vmul.f32 %v1594_v11, %v1586_v54 }
 0x37a   : > { %v929_v19 = vpop.permute.xlu0 %928 }
 0x37b   : > { %1438 = vmatmul.mubr.msk.bf16.vlgmr.msra.gmra.mxu0 %vm525_vm2, %v583_v10  ;;  %v695_v13 = vpack.c.bf16 %v694_v9, %v694_v9  ;;  %v934_v21 = vsel %vm589_vm3, %v929_v19, 0  ;;  %v1581_v9 = vld [vmem:[%s2039_s7 + $0x8] sm:$0xff]  }
 0x37c   : > { %1448 = vmatpush3.bf16.msra.mxu0 %v702_v12  ;;  %1449 = vmatprep.mubr.msk.bf16.mxu0 %vm1699_vm0, %v1698_v0 }
 0x37d   : > { %1459 = vmatprep.subr.bf16.mxu0 %v1698_v0 }
 0x380   : > { %v1596_v14 = vpop.eup %1595 }
 0x381   : > { %v810_v16 = vmul.f32 %v1596_v14, %v1588_v56  ;;  %v1375_v14 = vld [vmem:[%s2038_s6] ss:$0 sm:$0xff] }
 0x383   : > { %1450 = vmatmul.mubr.msk.bf16.vlgmr.msra.gmra.mxu0 %vm525_vm2, %v695_v13  ;;  %v811_v20 = vpack.c.bf16 %v810_v16, %v810_v16  ;;  %v1582_v13 = vld [vmem:[%s2039_s7] sm:$0xff]  }
 0x384   : > { %1461 = vmatprep.mubr.msk.bf16.mxu0 %vm1699_vm0, %v1698_v0 }
 0x39f   : > { %v924_v15 = vpop.xlane.xlu1 %923 }
 0x3a0   : > { %1597 = vrcp.f32 %v924_v15 }
 0x3a3   : > { %v813_v17 = vpop.permute.xlu1 %812 }
 0x3a4   : > { %v818_v18 = vsel %vm589_vm3, %v813_v17, 0 }
 0x3a5   : > { %1460 = vmatpush3.bf16.msra.mxu0 %v818_v18 }
 0x3a6   : > { %1471 = vmatprep.subr.bf16.mxu0 %v1698_v0 }
 0x3a8   : > { %1462 = vmatmul.mubr.msk.bf16.vlgmr.msra.gmra.mxu0 %vm525_vm2, %v811_v20 }
 0x3a9   : > { %1472 = vmatpush3.bf16.msra.mxu0 %v934_v21  ;;  %1473 = vmatprep.mubr.msk.bf16.mxu0 %vm1699_vm0, %v1698_v0 }
 0x3aa   : > { %1485 = vmatprep.subr.bf16.mxu0 %v1698_v0 }
 0x3ad   : > { %v1598_v22 = vpop.eup %1597 }
 0x3ae   : > { %v926_v23 = vmul.f32 %v1598_v22, %v1590_v61  ;;  %v1577_v61 = vld [vmem:[#allocation3 + $0x8] sm:$0xff]  }
 0x3b0   : > { %v927_v24 = vpack.c.bf16 %v926_v23, %v926_v23 }
 0x3b2   : > { %1474 = vmatmul.mubr.msk.bf16.vlgmr.msra.gmra.mxu0 %vm525_vm2, %v927_v24 }
 0x3b3   : > { %1489 = vmatprep.mubr.msk.bf16.mxu0 %vm1699_vm0, %v1698_v0  ;;  %1486 = vmatpush3.bf16.msra.mxu0 %v1577_v61 }
 0x3b4   : > { %1487 = vmatprep.subr.bf16.mxu0 %v1698_v0 }
 0x3b7   : > { %1488 = vmatpush3.bf16.msra.mxu0 %v1578_v62 }
 0x43b   : > { %v627_v25 = vpop.f32.mrf.mxu0 }
 0x43c   : > { %633 = vst.msk [vmem:[#allocation2] sm:$0xff] %vm525_vm2, %v627_v25 }
 0x43d   : > { %v1439_v26 = vpop.f32.mrf.mxu0 }
 0x43f   : > { %v630_v27 = vpop.f32.mrf.mxu0 }
 0x441   : > { %v1440_v28 = vpop.f32.mrf.mxu0 }
 0x443   : > { %v738_v29 = vpop.f32.mrf.mxu0 }
 0x444   : > { %745 = vrot.lane.b32.xlu1 %v738_v29, %s1711_s23 }
 0x445   : > { %v1451_v30 = vpop.f32.mrf.mxu0 }
 0x447   : > { %v741_v31 = vpop.f32.mrf.mxu0 }
 0x449   : > { %v1452_v32 = vpop.f32.mrf.mxu0 }
 0x468   : > { %v854_v34 = vpop.f32.mrf.mxu0 }
 0x469   : > { %861 = vrot.lane.b32.xlu0 %v854_v34, %s1712_s21  ;;  %s446_s21 = scalar_lea.vmem [#allocation6], %s1355_s22 }
 0x46a   : > { %v1463_v36 = vpop.f32.mrf.mxu0 }
 0x46c   : > { %v857_v37 = vpop.f32.mrf.mxu0 }
 0x46e   : > { %v1464_v38 = vpop.f32.mrf.mxu0 }
 0x46f   : > { %v1385_v38 = vld [vmem:[%s2043_s11] ss:$0 sm:$0xff] }
 0x472   : > { %v970_v39 = vpop.f32.mrf.mxu0 }
 0x473   : > { %977 = vrot.lane.b32.xlu1 %v970_v39, %s1713_s20  ;;  %s1278_s20 = sshll.u32 %s446_s21, 4  ;;  %s1279_s20 = int_to_ptr.vmem [resolvable:$true] %s1278_s20 }
 0x474   : > { %v1475_v40 = vpop.f32.mrf.mxu0  ;;  %s1629_s23 = scalar_lea.vmem %s1279_s20, 128  ;;  %p1636_p11 = scmp.lt.s32.totalorder %s1279_s20, %s1634_s30 }
 0x475   : > { %v1386_v40 = vld [vmem:[%s2044_s12] ss:$0 sm:$0xff]  ;;  %p1630_p6 = scmp.ne.s32.totalorder %s1279_s20, %s1629_s23  ;;  %p1637_p12 = scmp.lt.s32.totalorder %s1635_s29, %s1629_s23 }
 0x476   : > { %v973_v41 = vpop.f32.mrf.mxu0 }
 0x477   : > { %p1631_p9 = pnand %p1630_p6, %p1823_p5  ;;  %p1638_p13 = por %p1637_p12, %p1636_p11 }
 0x478   : > { %v1476_v42 = vpop.f32.mrf.mxu0 }
 0x479   : > { %p1632_p10 = pneg %p1631_p9 }
 0x47b   : > { %p1639_p0 = pnand %p1638_p13, %p1632_p10 }
 0x4b6   : > { %v746_v43 = vpop.permute.xlu1 %745 }
 0x4b7   : > { %749 = vst.msk [vmem:[#allocation2] sm:$0xff] %vm748_vm4, %v746_v43 }
 0x4db   : > { %v862_v44 = vpop.permute.xlu0 %861 }
 0x4dc   : > { %865 = vst.msk [vmem:[#allocation2] sm:$0xff] %vm864_vm5, %v862_v44 }
 0x4e5   : > { %v978_v45 = vpop.permute.xlu1 %977 }
 0x4e6   : > { %981 = vst.msk [vmem:[#allocation2] sm:$0xff] %vm980_vm6, %v978_v45 }
 0x4ed   : > { %v982_v46 = vld [vmem:[#allocation2] sm:$0xff] }
 0x4ee   : > { %v983_v47 = vpack.c.bf16 %v982_v46, %v982_v46 }
 0x4f0   : > { %1482 = vmatmul.mubr.msk.bf16.vlgmr.msra.gmra.mxu1 %vm477_vm1, %v983_v47 }
 0x4f1   : > { %1501 = vmatprep.mubr.msk.bf16.mxu1 %vm1699_vm0, %v1698_v0 }
 0x5b0   : > { %v1044_v49 = vpop.f32.mrf.mxu1 }
 0x5b1   : > { %v1045_v50 = vadd.f32 %v1369_v48, %v1044_v49 }
 0x5b2   : > { %v1483_v51 = vpop.f32.mrf.mxu1 }
 0x5b3   : > { %v1050_v52 = vadd.f32 %v1045_v50, %v1868_v3  ;;  %v1579_v3 = vld [vmem:[%s2039_s7 + $0x18] sm:$0xff]  }
 0x5b4   : > { %v1047_v53 = vpop.f32.mrf.mxu1  ;;  %1494 = vmatpush3.bf16.msra.mxu1 %v1579_v3 }
 0x5b5   : > { %v1051_v54 = vsel %vm477_vm1, %v1050_v52, 0.0  ;;  %1495 = vmatprep.subr.bf16.mxu1 %v1698_v0 }
 0x5b6   : > { %1052 = vadd.xlane.f32.xlu0 %v1051_v54  ;;  %v1484_v55 = vpop.f32.mrf.mxu1 }
 0x5b8   : > { %1496 = vmatpush3.bf16.msra.mxu1 %v1580_v63 }
 0x5b9   : > { %1497 = vmatprep.subr.bf16.mxu1 %v1698_v0 }
 0x5bc   : > { %1498 = vmatpush3.bf16.msra.mxu1 %v1581_v9 }
 0x5bd   : > { %1499 = vmatprep.subr.bf16.mxu1 %v1698_v0  ;;  %v1379_v0 = vld [vmem:[%s2040_s8] ss:$0 sm:$0xff] }
 0x5c0   : > { %1500 = vmatpush3.bf16.msra.mxu1 %v1582_v13 }
 0x63f   : > { %v1053_v56 = vpop.xlane.xlu0 %1052 }
 0x640   : > { %v1055_v57 = vmul.f32 0.03125, %v1053_v56 }
 0x642   : > { %v1056_v58 = vsub.f32 %v1050_v52, %v1055_v57 }
 0x644   : > { %v1057_v59 = vmul.f32 %v1056_v58, %v1056_v58 }
 0x646   : > { %v1058_v60 = vsel %vm477_vm1, %v1057_v59, 0.0 }
 0x647   : > { %1059 = vadd.xlane.f32.xlu1 %v1058_v60 }
 0x6d0   : > { %v1060_v1 = vpop.xlane.xlu1 %1059 }
 0x6d1   : > { %v1061_v2 = vmul.f32 0.03125, %v1060_v1 }
 0x6d3   : > { %v1062_v4 = vadd.f32 1e-05, %v1061_v2 }
 0x6d5   : > { %1599 = vrsqrt.f32 %v1062_v4 }
 0x6e2   : > { %v1600_v5 = vpop.eup %1599 }
 0x6e3   : > { %v1064_v7 = vmul.f32 %v1600_v5, %v1056_v58 }
 0x6e5   : > { %v1072_v10 = vmul.f32 %v1373_v6, %v1064_v7 }
 0x6e7   : > { %v1080_v11 = vadd.f32 %v1374_v8, %v1072_v10 }
 0x6e9   : > { %v1081_v12 = vpack.c.bf16 %v1080_v11, %v1080_v11 }
 0x6eb   : > { %1490 = vmatmul.mubr.msk.bf16.vlgmr.msra.gmra.mxu0 %vm477_vm1, %v1081_v12 }
 0x7ab   : > { %v1142_v15 = vpop.f32.mrf.mxu0 }
 0x7ac   : > { %v1143_v16 = vadd.f32 %v1375_v14, %v1142_v15 }
 0x7ad   : > { %v1491_v17 = vpop.f32.mrf.mxu0 }
 0x7ae   : > { %v1148_v18 = vmax.f32 %v1143_v16, 0.0 }
 0x7af   : > { %v1145_v19 = vpop.f32.mrf.mxu0 }
 0x7b0   : > { %v1149_v20 = vpack.c.bf16 %v1148_v18, %v1148_v18 }
 0x7b1   : > { %v1492_v21 = vpop.f32.mrf.mxu0 }
 0x7b2   : > { %1502 = vmatmul.mubr.msk.bf16.vlgmr.msra.gmra.mxu1 %vm1189_vm7, %v1149_v20 }
 0x872   : > { %v1227_v22 = vpop.f32.mrf.mxu1 }
 0x873   : > { %v1228_v23 = vadd.f32 %v1379_v0, %v1227_v22 }
 0x874   : > { %v1503_v24 = vpop.f32.mrf.mxu1 }
 0x875   : > { %v1233_v25 = vadd.f32 %v1228_v23, %v1080_v11 }
 0x876   : > { %v1230_v26 = vpop.f32.mrf.mxu1 }
 0x877   : > { %v1234_v27 = vsel %vm477_vm1, %v1233_v25, 0.0 }
 0x878   : > { %1235 = vadd.xlane.f32.xlu0 %v1234_v27  ;;  %v1504_v28 = vpop.f32.mrf.mxu1 }
 0x901   : > { %v1236_v29 = vpop.xlane.xlu0 %1235 }
 0x902   : > { %v1237_v30 = vmul.f32 0.03125, %v1236_v29 }
 0x904   : > { %v1238_v31 = vsub.f32 %v1233_v25, %v1237_v30 }
 0x906   : > { %v1239_v32 = vmul.f32 %v1238_v31, %v1238_v31 }
 0x908   : > { %v1240_v33 = vsel %vm477_vm1, %v1239_v32, 0.0 }
 0x909   : > { %1241 = vadd.xlane.f32.xlu0 %v1240_v33 }
 0x992   : > { %v1242_v34 = vpop.xlane.xlu0 %1241 }
 0x993   : > { %v1243_v35 = vmul.f32 0.03125, %v1242_v34 }
 0x995   : > { %v1244_v36 = vadd.f32 1e-05, %v1243_v35 }
 0x997   : > { %1601 = vrsqrt.f32 %v1244_v36 }
 0x9a4   : > { %v1602_v37 = vpop.eup %1601 }
 0x9a5   : > { %v1246_v39 = vmul.f32 %v1602_v37, %v1238_v31 }
 0x9a7   : > { %v1254_v41 = vmul.f32 %v1385_v38, %v1246_v39 }
 0x9a9   : > { %v1262_v42 = vadd.f32 %v1386_v40, %v1254_v41 }
 0x9ab   : > { %1263 = vst.msk [vmem:[%s446_s21] sm:$0xff] %vm477_vm1, %v1262_v42 }
 0x9ac   : > { %1642 = shalt.err (!%p1639_p0)
}
 0x9ad   : > { %s1643_s0 = scalar_lea.hbm %s1276_s2, 128  ;;  %s1647_s22 = scalar_lea.hbm %s2045_s13, 256 }
 0x9ae   : > { %p1644_p1 = scmp.ne.s32.totalorder %s1276_s2, %s1643_s0  ;;  %p1648_p4 = scmp.lt.s32.totalorder %s1276_s2, %s2045_s13 }
 0x9af   : > { %p1649_p7 = scmp.lt.s32.totalorder %s1647_s22, %s1643_s0 }
 0x9b0   : > { %p1645_p2 = pnand %p1644_p1, %p1823_p5 }
 0x9b1   : > { %p1650_p8 = por %p1649_p7, %p1648_p4 }
 0x9b2   : > { %p1646_p3 = pneg %p1645_p2 }
 0x9b4   : > { %p1651_p6 = pnand %p1650_p8, %p1646_p3 }
 0x9b6   : > { %1654 = shalt.err (!%p1651_p6)
}
 0x9b7   : > { %1509 = dma.vmem_to_hbm [thread:$0]  (%p1823_p5), %s1279_s20, 128, %s1276_s2, %s1265_s3  }
 0x9b8 PF: > { %p1521_p9 = scmp.ge.s32.totalorder %s1693_s28, 2  ;;  %s1290_s21 = sand.u32 1, %s1681_s25  }
 0x9b9   : > { %p2059_p10 = scmp.ne.s32.totalorder %s2052_s19, 0  ;;  %s1291_s23 = scalar_lea.sflag [#allocation5], %s1290_s21 }
 0x9bb   : > { %p1516_p11 = pnand %p1521_p9, %p2059_p10 }
 0x9bd   : > { %p1517_p12 = pneg %p1516_p11 }
 0x9bf   : > { %1676 = dma.done.wait (%p1517_p12), %s1291_s23, 128  }
 0x9c0   : > { %1678 = vsyncadd (%p1517_p12), %s1291_s23, 4294967168  ;;  %p24_p13 = scmp.ge.s32.totalorder %s1810_s14, 4   ;;  %s2060_s25 = smov %s1685_s26 }
 0x9c1   : > { %s2061_s26 = smov %s1689_s27  ;;  %s2062_s27 = smov %s1821_s17 }
 0x9c2   : > { %s2063_s28 = smov %s1810_s14  ;;  %26 = sbr.rel (!%p24_p13) target bundleno = 10 (0xa), region = 112 }
 0x9c7   :  { %1296 = vsyncpa [#allocation4], 1 }
 0x9c8   :  { %1298 = vsyncpa [#allocation4 + $0x1], 1 }
 0x9c9   :  { %1299 = vsyncpa [#allocation5], 1 }
 0x9ca   :  { %1301 = vsyncpa [#allocation5 + $0x1], 1 }

</bundles_post_ra>
